<compile_context>
chip_gen: v7x
topology: tpu7x:2x2x1
jax: 0.10.0
libtpu: 0.0.40
codegen_flags: <defaults>
</compile_context>

<pallas_src>
import jax
import jax.numpy as jnp
import numpy as np
from jax.experimental import pallas as pl
from jax.experimental.pallas import tpu as pltpu

LANE = 128


def _round_up(n, m):
    return ((n + m - 1) // m) * m


def _vmem_cap_bytes():
    """3/4 of physical VMEM (96 MiB on v5e/v6e, 48 MiB on v7x); v7x-safe fallback."""
    try:
        phys = int(pltpu.get_tpu_info().vmem_capacity_bytes)
    except Exception:
        phys = 64 * 1024 * 1024
    return (phys * 3) // 4


# ---------------------------------------------------------------------------
# Pallas kernel: ONE fat MXU matmul per grid step against a width-banded,
# KH-fused weight slab.  The x tile is loaded once; the KH row-shifted taps are
# value-level slices concatenated along the (128-aligned) K axis.  Accumulator,
# bias-add and stores are all lane-dense (last dim = Wo*Cout).
# ---------------------------------------------------------------------------
def _shared_conv_kernel(x_ref, w_ref, bias_ref, o_ref):
    # x_ref    : VMEM (Bt, Hp, WpCp)        padded input, lane-dense, K padded to 128 (bf16)
    # w_ref    : VMEM (KH*WpCp, Wo*Cout)    pre-mixed, width-banded, KH-fused slab (bf16)
    # bias_ref : VMEM (1, Wo*Cout)          bias, pre-tiled across Wo (f32)
    # o_ref    : VMEM (Bt, Ho, Wo*Cout)     lane-dense output block (bf16)
    Bt, Hp, WpCp = x_ref.shape
    Ho, WoC = o_ref.shape[1], o_ref.shape[2]
    KH = Hp - Ho + 1

    x = x_ref[...]                                          # single load of the tile
    # fold the KH taps into the contraction dim: (Bt, Ho, KH*WpCp)
    lhs = jnp.concatenate([x[:, kh:kh + Ho, :] for kh in range(KH)], axis=-1)
    lhs = lhs.reshape(Bt * Ho, KH * WpCp)                   # Ho % 8 == 0 -> no relayout
    acc = jnp.dot(lhs, w_ref[...], preferred_element_type=jnp.float32)
    out = acc + bias_ref[...]                               # f32 epilogue, full lanes
    o_ref[...] = out.reshape(Bt, Ho, WoC).astype(o_ref.dtype)


# ---------------------------------------------------------------------------
# bank(coefficient) mixing + width-banded / KH-fused weight slab construction.
# Done once per coefficient (cached by the layer), in f32, outside the kernel.
# ---------------------------------------------------------------------------
def build_banded_weight(coef, templates_toihw, bias_1c, *, width, padding,
                        mxu_dtype=jnp.bfloat16):
    T, Cout, Cin, KH, KW = templates_toihw.shape
    Wp = width + 2 * padding
    Wo = Wp - KW + 1
    WpC = Wp * Cin
    WpCp = _round_up(WpC, LANE)        # pad K so x rows are full-lane, unmasked loads
    WoC = Wo * Cout                    # best perf when WoC % 128 == 0 (128 in the demo)

    # bank(coefficient): mix templates ONCE (f32), never inside the grid loop.
    w_mix = jnp.einsum('t,toihw->oihw', coef, templates_toihw)      # (Cout,Cin,KH,KW)
    w_hwio = jnp.transpose(w_mix, (2, 3, 1, 0))                     # (KH,KW,Cin,Cout)

    # band[kh, j*Cin+ci, w*Cout+co] = w_mix[co,ci,kh,j-w]  if 0 <= j-w < KW else 0
    j = jnp.arange(Wp)[:, None]
    wcol = jnp.arange(Wo)[None, :]
    kw_of = j - wcol                                                # (Wp, Wo)
    valid = (kw_of >= 0) & (kw_of < KW)
    kw_cl = jnp.clip(kw_of, 0, KW - 1)
    bands = []
    for kh in range(KH):
        taps = w_hwio[kh][kw_cl]                                    # (Wp,Wo,Cin,Cout)
        taps = jnp.where(valid[:, :, None, None], taps, 0.0)
        band = jnp.transpose(taps, (0, 2, 1, 3)).reshape(WpC, WoC)
        band = jnp.pad(band, ((0, WpCp - WpC), (0, 0)))             # match x K-padding
        bands.append(band)
    # KH taps fused into K: one (KH*WpCp, WoC) matmul RHS
    w_band = jnp.concatenate(bands, axis=0).astype(mxu_dtype)

    bias_row = jnp.tile(bias_1c.reshape(1, Cout).astype(jnp.float32), (1, Wo))
    meta = dict(Cin=Cin, Cout=Cout, KH=KH, KW=KW, padding=padding,
                Wp=Wp, Wo=Wo, WpC=WpC, WpCp=WpCp, WoC=WoC)
    return w_band, bias_row, meta


def shared_conv2d_banded(x, w_band, bias_row, meta, *, batch_tile=None,
                         mxu_dtype=jnp.bfloat16, out_dtype=jnp.bfloat16,
                         data_format="NCHW", out_format="NCHW"):
    padding = meta["padding"]
    Cout, KH = meta["Cout"], meta["KH"]
    Wp, Wo = meta["Wp"], meta["Wo"]
    WpC, WpCp, WoC = meta["WpC"], meta["WpCp"], meta["WoC"]

    if data_format == "NCHW":
        x = jnp.transpose(x, (0, 2, 3, 1))   # -> NHWC (skipped if caller is channels-last)
    B, H, W, _ = x.shape
    assert Wp == W + 2 * padding
    Hp = H + 2 * padding
    Ho = Hp - KH + 1

    # halo pad + pack (w, c) into the lane dim, zero-pad K to a multiple of 128
    x = jnp.pad(x, ((0, 0), (padding, padding), (padding, padding), (0, 0)))
    x = x.reshape(B, Hp, WpC)
    if WpCp > WpC:
        x = jnp.pad(x, ((0, 0), (0, 0), (0, WpCp - WpC)))
    x = x.astype(mxu_dtype)

    # ---- batch tile: as many images per step as the VMEM budget allows
    # (target M = Bt*Ho ~ 2048 rows), keep >= 2 grid steps for v7x's 2 TensorCores ----
    x_bytes = np.dtype(mxu_dtype).itemsize
    o_bytes = np.dtype(out_dtype).itemsize
    per_img = Hp * WpCp * x_bytes + Ho * WoC * o_bytes       # double-buffered per image
    fixed = KH * WpCp * WoC * x_bytes + 2 * WoC * 4          # slab single-buffered + bias
    margin = 4 << 20
    cap = _vmem_cap_bytes()
    if batch_tile is None:
        bt = min(B, max(1, 2048 // max(Ho, 1)), max(1, B // 2))
        while bt > 1 and (B % bt or fixed + 2 * bt * per_img + margin > cap):
            bt -= 1
        batch_tile = bt
    Bt = batch_tile
    assert B % Bt == 0
    vmem_limit = int(max(32 << 20, min(cap, fixed + 2 * Bt * per_img + margin)))

    out = pl.pallas_call(
        _shared_conv_kernel,
        out_shape=jax.ShapeDtypeStruct((B, Ho, WoC), out_dtype),
        grid=(B // Bt,),
        in_specs=[
            pl.BlockSpec((Bt, Hp, WpCp), lambda b: (b, 0, 0)),            # x slab
            pl.BlockSpec((KH * WpCp, WoC), lambda b: (0, 0),
                         pipeline_mode=pl.Buffered(1)),                   # weight slab
            pl.BlockSpec((1, WoC), lambda b: (0, 0),
                         pipeline_mode=pl.Buffered(1)),                   # bias row
        ],
        out_specs=pl.BlockSpec((Bt, Ho, WoC), lambda b: (b, 0, 0)),       # lane-dense out
        compiler_params=pltpu.CompilerParams(
            dimension_semantics=("parallel",),
            vmem_limit_bytes=vmem_limit,
        ),
    )(x, w_band, bias_row)

    out = out.reshape(B, Ho, Wo, Cout)
    if out_format == "NCHW":
        out = jnp.transpose(out, (0, 3, 1, 2))
    return out


# ---------------------------------------------------------------------------
# JAX-side re-implementation of SharedLayer forward semantics (template-bank
# Conv2d concrete subclass).  Parameters are created deterministically.
# ---------------------------------------------------------------------------
class SharedConv2d:
    def __init__(self, key, num_specialists, hard_sharing, use_template_bank,
                 num_templates, in_channels, out_channels, kernel_size, padding=1,
                 out_dtype=jnp.bfloat16):
        assert use_template_bank, "this synthetic instantiation uses the template bank path"
        self.hard_sharing = hard_sharing
        self.use_template_bank = use_template_bank
        self.num_coefficients = 1 if hard_sharing else num_specialists
        self.padding = padding
        self.out_dtype = out_dtype
        self.tied = False
        self.tied_coef = None
        self._band_cache = {}   # (coef key, width) -> (w_band, bias_row, meta)

        k_t, k_b, *k_c = jax.random.split(key, 2 + self.num_coefficients)
        # bank: num_templates conv weight templates, PyTorch layout (T, Cout, Cin, KH, KW)
        self.templates = 0.1 * jax.random.normal(
            k_t, (num_templates, out_channels, in_channels, kernel_size, kernel_size),
            jnp.float32)
        self.bias = 0.05 * jax.random.normal(k_b, (1, out_channels), jnp.float32)
        # per-specialist mixing coefficients, shape (num_templates,)
        self.coefficients = [
            1.0 / num_templates
            + 0.2 * jax.random.normal(k_c[i], (num_templates,), jnp.float32)
            for i in range(self.num_coefficients)
        ]

    # tie/release mirror the PyTorch module (host-side parameter bookkeeping).
    def tie(self):
        if self.hard_sharing:
            return
        self.tied_coef = self.coefficients[0]
        self.tied = True

    def release(self):
        if self.hard_sharing:
            return
        self.coefficients = [self.tied_coef for _ in range(self.num_coefficients)]
        self.tied = False
        self._band_cache.clear()   # mixed weights changed

    def _banded(self, cache_key, coefficient, width):
        # TODO(synk): during training coefficients/templates change every step; drop
        # this cache (or key it on a parameter-version counter) in that setting.
        k = (cache_key, int(width))
        if k not in self._band_cache:
            self._band_cache[k] = build_banded_weight(
                coefficient, self.templates, self.bias,
                width=width, padding=self.padding)
        return self._band_cache[k]

    def _forward(self, x, cache_key, coefficient):
        w_band, bias_row, meta = self._banded(cache_key, coefficient, x.shape[-1])
        return shared_conv2d_banded(x, w_band, bias_row, meta, out_dtype=self.out_dtype)

    def forward(self, x, specialist, average_specialists=False):
        if average_specialists and (not self.tied):
            coefficient = sum(self.coefficients) / self.num_coefficients
            return self._forward(x, ('avg',), coefficient)
        idx = 0 if self.hard_sharing else specialist
        coefficient = self.coefficients[idx]
        cache_key = ('spec', idx)
        if self.tied:
            coefficient = self.tied_coef
            cache_key = ('tied',)
        return self._forward(x, cache_key, coefficient)

    # TODO(synk): the no-template-bank path (`no_coef_modules`, plain per-specialist
    # conv modules) is the coefficient path with T=1 identity mixing; omitted here.


if __name__ == "__main__":
    key = jax.random.PRNGKey(0)
    k_x, k_p = jax.random.split(key)

    B, Cin, H, W = 2, 4, 16, 16
    Cout, K, T, S = 8, 3, 4, 3

    x = jax.random.normal(k_x, (B, Cin, H, W), jnp.float32)
    layer = SharedConv2d(k_p, num_specialists=S, hard_sharing=False,
                         use_template_bank=True, num_templates=T,
                         in_channels=Cin, out_channels=Cout, kernel_size=K, padding=1)

    # specialist path
    out = jax.block_until_ready(layer.forward(x, specialist=1))
    assert out.shape == (B, Cout, H, W)

    # reference (plain JAX) check: bf16 MXU operands, f32 accumulate, bf16 output.
    w_mix = jnp.einsum('t,toihw->oihw', layer.coefficients[1], layer.templates)
    xb = x.astype(jnp.bfloat16).astype(jnp.float32)
    wb = w_mix.astype(jnp.bfloat16).astype(jnp.float32)
    ref = jax.lax.conv_general_dilated(
        xb, wb, window_strides=(1, 1), padding=((1, 1), (1, 1)),
        dimension_numbers=('NCHW', 'OIHW', 'NCHW'),
        precision=jax.lax.Precision.HIGHEST) + layer.bias.reshape(1, -1, 1, 1)
    np.testing.assert_allclose(np.asarray(out).astype(np.float32), np.asarray(ref),
                               atol=2e-2, rtol=2e-2)

    # average_specialists path
    out_avg = jax.block_until_ready(layer.forward(x, specialist=0, average_specialists=True))
    assert out_avg.shape == (B, Cout, H, W)

    # tie / release bookkeeping path
    layer.tie()
    layer.release()
    out_tied = jax.block_until_ready(layer.forward(x, specialist=2))
    assert out_tied.shape == (B, Cout, H, W)

    print("KERNEL_OK")
</pallas_src>

<mosaic_0001>
module attributes {stable_mosaic.version = 11 : i64} {
  func.func @_shared_conv_kernel(%arg0: i32, %arg1: memref<1x18x128xbf16, #tpu.memory_space<vmem>>, %arg2: memref<384x128xbf16, #tpu.memory_space<vmem>>, %arg3: memref<1x128xf32, #tpu.memory_space<vmem>>, %arg4: memref<1x16x128xbf16, #tpu.memory_space<vmem>>) attributes {dimension_semantics = [#tpu.dimension_semantics<parallel>], iteration_bounds = array<i64: 2>, scalar_prefetch = 0 : i64, scratch_operands = 0 : i64, tpu.core_type = #tpu.core_type<tc>, window_params = [{transform_indices = @transform_0, window_bounds = array<i64: 1, 18, 128>}, {pipeline_mode = #tpu.pipeline_mode<synchronous>, transform_indices = @transform_1, window_bounds = array<i64: 384, 128>}, {pipeline_mode = #tpu.pipeline_mode<synchronous>, transform_indices = @transform_2, window_bounds = array<i64: 1, 128>}, {transform_indices = @transform_3, window_bounds = array<i64: 1, 16, 128>}]} {
    %c0 = arith.constant 0 : index
    %c0_0 = arith.constant 0 : index
    %c0_1 = arith.constant 0 : index
    %0 = vector.load %arg1[%c0, %c0_0, %c0_1] : memref<1x18x128xbf16, #tpu.memory_space<vmem>>, vector<1x18x128xbf16>
    %1 = vector.extract_strided_slice %0 {offsets = [0, 0, 0], sizes = [1, 16, 128], strides = [1, 1, 1]} : vector<1x18x128xbf16> to vector<1x16x128xbf16>
    %2 = vector.extract_strided_slice %0 {offsets = [0, 1, 0], sizes = [1, 16, 128], strides = [1, 1, 1]} : vector<1x18x128xbf16> to vector<1x16x128xbf16>
    %3 = vector.extract_strided_slice %0 {offsets = [0, 2, 0], sizes = [1, 16, 128], strides = [1, 1, 1]} : vector<1x18x128xbf16> to vector<1x16x128xbf16>
    %4 = tpu.concatenate %1, %2, %3 in 2 : vector<1x16x128xbf16>, vector<1x16x128xbf16>, vector<1x16x128xbf16> -> vector<1x16x384xbf16>
    %5 = vector.shape_cast %4 : vector<1x16x384xbf16> to vector<16x384xbf16>
    %c0_2 = arith.constant 0 : index
    %c0_3 = arith.constant 0 : index
    %6 = vector.load %arg2[%c0_2, %c0_3] : memref<384x128xbf16, #tpu.memory_space<vmem>>, vector<384x128xbf16>
    %cst = arith.constant dense<0.000000e+00> : vector<16x128xf32>
    %7 = tpu.matmul %5, %6, %cst {dimension_numbers = #tpu.dot_dimension_numbers<[1], [0], [0], [1], [0, 0, 1, 1], [], []>} : vector<16x384xbf16>, vector<384x128xbf16>, vector<16x128xf32> -> vector<16x128xf32>
    %c0_4 = arith.constant 0 : index
    %c0_5 = arith.constant 0 : index
    %8 = vector.load %arg3[%c0_4, %c0_5] : memref<1x128xf32, #tpu.memory_space<vmem>>, vector<1x128xf32>
    %9 = vector.broadcast %8 : vector<1x128xf32> to vector<16x128xf32>
    %10 = arith.addf %7, %9 : vector<16x128xf32>
    %11 = vector.shape_cast %10 : vector<16x128xf32> to vector<1x16x128xf32>
    %12 = arith.truncf %11 : vector<1x16x128xf32> to vector<1x16x128xbf16>
    %c0_6 = arith.constant 0 : index
    %c0_7 = arith.constant 0 : index
    %c0_8 = arith.constant 0 : index
    %13 = vector.load %arg4[%c0_6, %c0_7, %c0_8] : memref<1x16x128xbf16, #tpu.memory_space<vmem>>, vector<1x16x128xbf16>
    tpu.vector_store %arg4[%c0_6, %c0_7, %c0_8], %12 {strides = array<i32>} : memref<1x16x128xbf16, #tpu.memory_space<vmem>>, vector<1x16x128xbf16>,
    return
  }
  func.func @transform_0(%arg0: i32) -> (i32, i32, i32) {
    %c0_i32 = arith.constant 0 : i32
    %c0_i32_0 = arith.constant 0 : i32
    %c0_i32_1 = arith.constant 0 : i32
    return %arg0, %c0_i32, %c0_i32_0 : i32, i32, i32
  }
  func.func @transform_1(%arg0: i32) -> (i32, i32) {
    %c0_i32 = arith.constant 0 : i32
    %c0_i32_0 = arith.constant 0 : i32
    %c0_i32_1 = arith.constant 0 : i32
    return %c0_i32, %c0_i32_0 : i32, i32
  }
  func.func @transform_2(%arg0: i32) -> (i32, i32) {
    %c0_i32 = arith.constant 0 : i32
    %c0_i32_0 = arith.constant 0 : i32
    %c0_i32_1 = arith.constant 0 : i32
    return %c0_i32, %c0_i32_0 : i32, i32
  }
  func.func @transform_3(%arg0: i32) -> (i32, i32, i32) {
    %c0_i32 = arith.constant 0 : i32
    %c0_i32_0 = arith.constant 0 : i32
    %c0_i32_1 = arith.constant 0 : i32
    return %arg0, %c0_i32, %c0_i32_0 : i32, i32, i32
  }
}

</mosaic_0001>

<bundles_post_ra>
// kernel: tpu_custom_call.1
= control target key start
LH: loop header
LB: loop body
LE: loop exit
PB: predicated region body
PF: predicated region fallthrough
CT: control target
= control target key end

     0   :  { %8 = vsyncpa [#allocation3], 0  ;;  %s1053_s0 = inlined_call_operand.vmem [shape: bf16[2,18,128], index: 0, kind: input, shape index: {}]   ;;  %s1054_s1 = inlined_call_operand.hbm [shape: bf16[384,128], index: 1, kind: input, shape index: {}]   ;;  %s1055_s2 = inlined_call_operand.vmem [shape: f32[1,128], index: 2, kind: input, shape index: {}]   ;;  %s1056_s3 = inlined_call_operand.hbm [shape: bf16[2,16,128], index: 3, kind: output, shape index: {}]  }
   0x1   :  { %9 = vsyncpa [#allocation4], 0 }
   0x2   :  { %11 = vsyncpa [#allocation4 + $0x1], 0  ;;  %s903_s12 = smov 0   ;;  %s905_s13 = smov 0  }
   0x3   :  { %s907_s14 = smov 0   ;;  %s909_s15 = smov 0  }
   0x4 LB: > { %s924_s16 = sadd.s32 4294967295, %s873_s15   ;;  %s595_s17 = sadd.s32 4294967294, %s873_s15   ;;  %s873_s15 = sphi %s909_s15, %s1072_s15   ;;  %s869_s14 = sphi %s907_s14, %s1071_s14   ;;  %s865_s13 = sphi %s905_s13, %s1070_s13   ;;  %s861_s12 = sphi %s903_s12, %s1069_s12  }
   0x5   : > { %s928_s18 = sadd.s32 1, %s873_s15   ;;  %s92_s19 = sadd.s32 1, %s869_s14 }
   0x6   : > { %s89_s20 = ssub.s32 %s873_s15, %s928_s18  ;;  %p102_p0 = scmp.ne.s32.totalorder %s869_s14, %s865_s13 }
   0x7   : > { %p90_p1 = scmp.eq.s32.totalorder %s89_s20, 0  ;;  %p103_p2 = scmp.eq.s32.totalorder %s924_s16, 1 }
   0x8   : > { %p108_p3 = scmp.ne.s32.totalorder %s865_s13, %s861_s12  ;;  %p109_p4 = scmp.eq.s32.totalorder %s595_s17, 1 }
   0x9   : > { %s939_s21 = scalar_select %p90_p1, %s869_s14, %s92_s19  }
   0xa   : > { %p941_p5 = por %p103_p2, %p102_p0  ;;  %p945_p6 = por %p109_p4, %p108_p3 }
   0xb   : > { %p596_p7 = scmp.ge.s32.totalorder %s873_s15, 1  ;;  %p116_p8 = scmp.lt.s32.totalorder %s873_s15, 3 }
   0xc   : > { %s1060_s22 = scalar_select %p941_p5, 1, 0 }
   0xd   : > { %s1061_s23 = scalar_select %p945_p6, 1, 0 }
   0xe   : > { %p1057_p9 = scmp.eq.s32.totalorder %s924_s16, 0  ;;  %p952_p10 = pnand %p596_p7, %p116_p8 }
   0xf   : > { %s875_s25 = smov [#allocation2]   ;;  %s779_s30 = scalar_lea.hbm %s1054_s1, 3072 }
  0x10   : > { %s1062_s24 = scalar_select %p952_p10, 1, 0 }
  0x11   : > { %s128_s26 = sshll.u32 %s875_s25, 4  ;;  %p703_p11 = pneg %p952_p10  ;;  %s129_s26 = int_to_ptr.vmem [resolvable:$true] %s128_s26 }
  0x12   : > { %p780_p13 = scmp.ne.s32.totalorder %s1054_s1, %s779_s30  ;;  %p786_p3 = scmp.lt.u32.totalorder %s779_s30, %s1054_s1 }
  0x13   : > { %p960_p12 = pnand %p1057_p9, %p703_p11 }
  0x15   : > { %p781_p0 = pneg %p960_p12 }
  0x17   : > { %p782_p1 = pnand %p781_p0, %p780_p13 }
  0x19   : > { %p783_p2 = pneg %p782_p1 }
  0x1b   : > { %p788_p4 = pnand %p786_p3, %p783_p2 }
  0x1d   : > { %791 = shalt.err (!%p788_p4)
}
  0x1e   : > { %s792_s8 = scalar_lea.vmem %s129_s26, 3072  ;;  %p800_p9 = scmp.lt.s32.totalorder %s129_s26, %s129_s26 }
  0x1f   : > { %p793_p7 = scmp.ne.s32.totalorder %s129_s26, %s792_s8  ;;  %p801_p6 = scmp.lt.s32.totalorder %s792_s8, %s792_s8 }
  0x21   : > { %p795_p8 = pnand %p793_p7, %p781_p0  ;;  %p802_p5 = por %p801_p6, %p800_p9 }
  0x23   : > { %p796_p11 = pneg %p795_p8 }
  0x25   : > { %p803_p10 = pnand %p802_p5, %p796_p11 }
  0x27   : > { %806 = shalt.err (!%p803_p10)
}
  0x28   : > { %s876_s9 = smov 64   ;;  %s877_s10 = smov 4  }
  0x29   : > { %706 = dma.hbm_to_vmem [thread:$0]  (!%p960_p12), %s1054_s1, 3072, %s129_s26, [#allocation3], %s876_s9, %s876_s9, %s877_s10  }
  0x2a   : > { %p1064_p13 = scmp.ne.s32.totalorder %s1062_s24, 0 }
  0x2b   : > { %p1065_p1 = scmp.eq.s32.totalorder (!%p1064_p13), %s924_s16, 0 }
  0x2c   : > { %155 = sbr.rel (%p1064_p13) target bundleno = 324 (0x144), region = 32 }
  0x33   : > { %852 = dma.done.wait (%p1065_p1), [#allocation3], 3072   ;;  %p1066_p0 = pmov %p1065_p1 }
  0x34   : > { %v878_v0 = vmov 0.0   ;;  %vm879_vm0 = vmmov 0   ;;  %v753_v1 = vld [vmem:[#allocation2 + $0x40] sm:$0xff]   ;;  %v756_v4 = vld [vmem:[#allocation2 + $0x48] sm:$0xff]   ;;  %v759_v7 = vld [vmem:[#allocation2 + $0x50] sm:$0xff]   ;;  %p179_p5 = scmp.lt.s32.totalorder %s924_s16, 1 }
  0x35   : > { %854 = vsyncadd (%p1066_p0), [#allocation3], 4294964224  ;;  %676 = vmatprep.subr.bf16.mxu1 %v878_v0  ;;  %692 = vmatprep.mubr.msk.bf16.mxu1 %vm879_vm0, %v878_v0  ;;  %v754_v2 = vld [vmem:[#allocation2] sm:$0xff]   ;;  %v757_v5 = vld [vmem:[#allocation2 + $0x8] sm:$0xff]   ;;  %vm197_vm1 = vsmask.f32 7424 }
  0x36   : > { %645 = vmatprep.subr.bf16.mxu0 %v753_v1  ;;  %v755_v3 = vld [vmem:[#allocation2 + $0x80] sm:$0xff]   ;;  %v758_v6 = vld [vmem:[#allocation2 + $0x88] sm:$0xff]   ;;  %v760_v8 = vld [vmem:[#allocation2 + $0x10] sm:$0xff]   ;;  %s180_s19 = scalar_select %p179_p5, %s924_s16, 1  ;;  %vm211_vm2 = vcmask 1046528  }
  0x37   : > { %646 = vmatpush3.bf16.msra.mxu0 %v754_v2  ;;  %677 = vmatpush3.bf16.msra.mxu1 %v755_v3  ;;  %v761_v9 = vld [vmem:[#allocation2 + $0x90] sm:$0xff]   ;;  %v762_v10 = vld [vmem:[#allocation2 + $0x58] sm:$0xff]   ;;  %v765_v13 = vld [vmem:[#allocation2 + $0x60] sm:$0xff]   ;;  %s176_s27 = sand.u32 1, %s865_s13   ;;  %s639_s6 = sshll.u32 %s924_s16, 7 }
  0x38   : > { %647 = vmatprep.subr.bf16.mxu0 %v756_v4  ;;  %678 = vmatprep.subr.bf16.mxu1 %v878_v0  ;;  %v763_v11 = vld [vmem:[#allocation2 + $0x18] sm:$0xff]   ;;  %v766_v14 = vld [vmem:[#allocation2 + $0x20] sm:$0xff]   ;;  %v768_v16 = vld [vmem:[#allocation2 + $0x68] sm:$0xff]   ;;  %s696_s20 = smul.u32 12, %s180_s19  ;;  %s601_s28 = sshll.u32 %s176_s27, 3 }
  0x39   : > { %v764_v12 = vld [vmem:[#allocation2 + $0x98] sm:$0xff]   ;;  %v767_v15 = vld [vmem:[#allocation2 + $0xa0] sm:$0xff]   ;;  %v769_v17 = vld [vmem:[#allocation2 + $0x28] sm:$0xff]   ;;  %s178_s4 = scalar_lea.vmem [#allocation5], %s601_s28  ;;  %s1010_s9 = scalar_lea.hbm %s1056_s3, %s639_s6 }
  0x3a   : > { %v770_v18 = vld [vmem:[#allocation2 + $0xa8] sm:$0xff]   ;;  %v771_v19 = vld [vmem:[#allocation2 + $0x70] sm:$0xff]   ;;  %s183_s26 = scalar_lea.vmem %s1053_s0, %s696_s20  ;;  %v774_v22 = vld [vmem:[#allocation2 + $0x78] sm:$0xff]   ;;  %s521_s5 = sshll.u32 %s178_s4, 4  ;;  %s1005_s5 = int_to_ptr.vmem [resolvable:$true] %s521_s5 }
  0x3b   : > { %648 = vmatpush3.bf16.msra.mxu0 %v757_v5  ;;  %679 = vmatpush3.bf16.msra.mxu1 %v758_v6  ;;  %v772_v20 = vld [vmem:[#allocation2 + $0x30] sm:$0xff]   ;;  %v776_v23 = vld [vmem:[%s183_s26] sm:$0xff]   ;;  %v775_v28 = vld [vmem:[#allocation2 + $0x38] sm:$0xff]   ;;  %s1012_s10 = scalar_lea.sflag [#allocation4], %s176_s27  ;;  %s807_s11 = scalar_lea.vmem %s1005_s5, 128 }
  0x3c   : > { %649 = vmatprep.subr.bf16.mxu0 %v759_v7  ;;  %680 = vmatprep.subr.bf16.mxu1 %v878_v0  ;;  %v773_v21 = vld [vmem:[#allocation2 + $0xb0] sm:$0xff]   ;;  %v199_v25 = vshrl.u32 %v776_v23, 16  ;;  %v201_v26 = vshll.u32 %v776_v23, 16  ;;  %v778_v31 = vld [vmem:[#allocation2 + $0xb8] sm:$0xff]   ;;  %v212_v32 = vrot.slane %v776_v23, 1  ;;  %p808_p6 = scmp.ne.s32.totalorder %s1005_s5, %s807_s11  ;;  %p1067_p9 = scmp.ne.s32.totalorder %s1060_s22, 0 }
  0x3d   : > { %v777_v24 = vld [vmem:[%s183_s26 + $0x8] ss:$0 sps:$4 sm:$0x11]   ;;  %v605_v39 = vld [vmem:[%s1055_s2] ss:$0 sm:$0xff]  ;;  %s880_s16 = smov [#allocation5]  }
  0x3e   : > { %v206_v27 = vshll.u32 %v777_v24, 16  ;;  %v203_v29 = vrot.slane %v201_v26, 1  ;;  %v213_v33 = vrot.slane %v777_v24, 1  ;;  %p809_p10 = pnand %p808_p6, %p1067_p9  ;;  %s811_s17 = sshll.u32 %s880_s16, 4  ;;  %s812_s17 = int_to_ptr.vmem [resolvable:$false] %s811_s17 }
  0x3f   : > { %650 = vmatpush3.bf16.msra.mxu0 %v760_v8  ;;  %681 = vmatpush3.bf16.msra.mxu1 %v761_v9  ;;  %s813_s19 = scalar_lea.vmem %s812_s17, 256  ;;  %p814_p2 = scmp.lt.s32.totalorder %s1005_s5, %s812_s17 }
  0x40   : > { %651 = vmatprep.subr.bf16.mxu0 %v762_v10  ;;  %682 = vmatprep.subr.bf16.mxu1 %v878_v0  ;;  %v208_v30 = vrot.slane %v206_v27, 1  ;;  %v204_v34 = vor.u32 %v203_v29, %v199_v25  ;;  %v214_v36 = vsel %vm211_vm2, %v212_v32, %v213_v33  ;;  %p810_p12 = pneg %p809_p10  ;;  %p815_p3 = scmp.lt.s32.totalorder %s813_s19, %s807_s11 }
  0x42   : > { %v209_v35 = vsel %vm197_vm1, %v204_v34, %v208_v30  ;;  %p816_p4 = por %p815_p3, %p814_p2 }
  0x43   : > { %652 = vmatpush3.bf16.msra.mxu0 %v763_v11  ;;  %683 = vmatpush3.bf16.msra.mxu1 %v764_v12 }
  0x44   : > { %653 = vmatprep.subr.bf16.mxu0 %v765_v13  ;;  %684 = vmatprep.subr.bf16.mxu1 %v878_v0  ;;  %p817_p7 = pnand %p816_p4, %p810_p12 }
  0x45   : > { %447 = vmatprep.mubr.bf16.mxu0 %v209_v35 }
  0x47   : > { %654 = vmatpush3.bf16.msra.mxu0 %v766_v14  ;;  %685 = vmatpush3.bf16.msra.mxu1 %v767_v15 }
  0x48   : > { %655 = vmatprep.subr.bf16.mxu0 %v768_v16  ;;  %686 = vmatprep.subr.bf16.mxu1 %v878_v0 }
  0x4b   : > { %656 = vmatpush3.bf16.msra.mxu0 %v769_v17  ;;  %687 = vmatpush3.bf16.msra.mxu1 %v770_v18 }
  0x4c   : > { %657 = vmatprep.subr.bf16.mxu0 %v771_v19  ;;  %688 = vmatprep.subr.bf16.mxu1 %v878_v0 }
  0x4f   : > { %658 = vmatpush3.bf16.msra.mxu0 %v772_v20  ;;  %689 = vmatpush3.bf16.msra.mxu1 %v773_v21 }
  0x50   : > { %659 = vmatprep.subr.bf16.mxu0 %v774_v22  ;;  %690 = vmatprep.subr.bf16.mxu1 %v878_v0 }
  0x53   : > { %660 = vmatpush3.bf16.msra.mxu0 %v775_v28  ;;  %691 = vmatpush3.bf16.msra.mxu1 %v778_v31 }
  0x56   : > { %448 = vmatmul.mubr.bf16.vlgmr.msra.gmra.mrb[0].mxu0 %v776_v23  ;;  %693 = vmatmul.mubr.bf16.vlgmr.msra.gmra.mrb[0].mxu1 %v214_v36 }
 0x129   : > { %v661_v37 = vpop.f32.mrb[0].mxu0  ;;  %v490_v40 = vpop.f32.mrb[0].mxu1 }
 0x12a   : > { %v662_v38 = vpop.f32.mrb[1].mxu0  ;;  %v694_v43 = vpop.f32.mrb[1].mxu1 }
 0x12b   : > { %v663_v41 = vadd.f32 %v662_v38, %v661_v37  ;;  %v664_v42 = vpop.f32.mrb[2].mxu0  ;;  %v493_v45 = vpop.f32.mrb[2].mxu1 }
 0x12c   : > { %v665_v44 = vpop.f32.mrb[3].mxu0  ;;  %v695_v48 = vpop.f32.mrb[3].mxu1 }
 0x12d   : > { %v450_v46 = vadd.f32 %v663_v41, %v605_v39  ;;  %v666_v47 = vadd.f32 %v665_v44, %v664_v42 }
 0x12f   : > { %v491_v49 = vadd.f32 %v490_v40, %v450_v46  ;;  %v453_v50 = vadd.f32 %v666_v47, %v605_v39 }
 0x131   : > { %v494_v51 = vadd.f32 %v493_v45, %v453_v50 }
 0x133   : > { %v643_v52 = vpack.c.bf16 %v494_v51, %v491_v49 }
 0x135   : > { %644 = vst [vmem:[%s178_s4] sm:$0xff] %v643_v52  }
 0x136   : > { %820 = shalt.err (!%p817_p7)
}
 0x137   : > { %s821_s20 = scalar_lea.hbm %s1010_s9, 128  ;;  %s825_s26 = scalar_lea.hbm %s1056_s3, 256 }
 0x138   : > { %p822_p8 = scmp.ne.s32.totalorder %s1010_s9, %s821_s20  ;;  %p826_p1 = scmp.lt.u32.totalorder %s1010_s9, %s1056_s3 }
 0x139   : > { %p827_p0 = scmp.lt.u32.totalorder %s825_s26, %s821_s20  ;;  %p829_p6 = scmp.lt.u32.totalorder %s821_s20, %s1010_s9 }
 0x13a   : > { %p823_p11 = pnand %p822_p8, %p1067_p9 }
 0x13b   : > { %p828_p5 = por %p827_p0, %p826_p1 }
 0x13c   : > { %p824_p13 = pneg %p823_p11 }
 0x13d   : > { %p830_p10 = por %p829_p6, %p828_p5 }
 0x13f   : > { %p831_p12 = pnand %p830_p10, %p824_p13 }
 0x141   : > { %834 = shalt.err (!%p831_p12)
}
 0x142   : > { %s881_s29 = smov 64   ;;  %s882_s30 = smov 4  }
 0x143   : > { %701 = dma.vmem_to_hbm [thread:$0]  (%p1067_p9), %s1005_s5, 128, %s1010_s9, %s1012_s10, %s881_s29, %s881_s29, %s882_s30  }
 0x144 PF: > { %p713_p2 = scmp.ge.s32.totalorder %s873_s15, 2  ;;  %s536_s4 = sand.u32 1, %s861_s12  }
 0x145   : > { %p1068_p3 = scmp.ne.s32.totalorder %s1061_s23, 0  ;;  %s537_s6 = scalar_lea.sflag [#allocation4], %s536_s4 }
 0x147   : > { %p708_p4 = pnand %p713_p2, %p1068_p3 }
 0x149   : > { %856 = dma.done.wait (!%p708_p4), %s537_s6, 128  }
 0x14a   : > { %858 = vsyncadd (!%p708_p4), %s537_s6, 4294967168  ;;  %p14_p7 = scmp.ge.s32.totalorder %s928_s18, 4   ;;  %s1069_s12 = smov %s865_s13 }
 0x14b   : > { %s1070_s13 = smov %s869_s14  ;;  %s1071_s14 = smov %s939_s21 }
 0x14c   : > { %s1072_s15 = smov %s928_s18  ;;  %16 = sbr.rel (!%p14_p7) target bundleno = 4 (0x4), region = 72 }
 0x153   :  { %542 = vsyncpa [#allocation3], 1 }
 0x154   :  { %544 = vsyncpa [#allocation3 + $0x1], 1 }
 0x155   :  { %545 = vsyncpa [#allocation4], 1 }
 0x156   :  { %547 = vsyncpa [#allocation4 + $0x1], 1 }

</bundles_post_ra>
